<compile_context>
chip_gen: v5e
topology: v5e:2x2
jax: 0.10.0
libtpu: 0.0.40
codegen_flags: <defaults>
</compile_context>

<pallas_src>
import functools

import jax
import jax.numpy as jnp
from jax.experimental import pallas as pl
from jax.experimental.pallas import tpu as pltpu


def _round_up(x, m):
    return (x + m - 1) // m * m


def _focal_kernel(pred_ref, tgt_ref, out_ref, acc_ref, *,
                  gamma, scale, hw, t_hw, needs_mask):
    """Focal-loss hot path + lane-wise accumulation + per-n epilogue.

    pred_ref: (bn, C, t_hw) logits tile (VMEM, original dtype)
    tgt_ref : (bn, 1, t_hw) int32 labels tile (VMEM, lane-dense)
    out_ref : (1, 1)  f32 partial sum for this batch block (SMEM)
    acc_ref : (bn, 1, t_hw) f32 vector accumulator (VMEM scratch)
    """
    j = pl.program_id(1)
    last_j = pl.num_programs(1) - 1

    @pl.when(j == 0)
    def _():
        acc_ref[...] = jnp.zeros_like(acc_ref)

    x = pred_ref[...].astype(jnp.float32)               # (bn, C, t_hw)
    t = tgt_ref[...]                                     # (bn, 1, t_hw) int32

    # one-hot: class id of each sublane row vs. lane-dense target labels.
    classes = jax.lax.broadcasted_iota(jnp.int32, x.shape, 1)
    y = (classes == t).astype(jnp.float32)               # (bn, C, t_hw)

    # numerically stable BCE-with-logits (reduction='none')
    e = jnp.exp(-jnp.abs(x))
    ce = jnp.maximum(x, 0.0) - x * y + jnp.log1p(e)

    if gamma == 0.0:
        # gamma == 0 fast path (module default): no sigmoid, no p_t, no pow.
        loss = ce
    else:
        # Reuse e = exp(-|x|): sigmoid(x) = where(x>=0, r, 1-r), r = 1/(1+e).
        # TODO(synk): pl.reciprocal(approx=True) would move this fully onto the
        # EUP approx path; kept exact to preserve tight numerical agreement.
        r = pl.reciprocal(1.0 + e, approx=False)
        p = jnp.where(x >= 0.0, r, 1.0 - r)
        omp = jnp.abs(p - y)                              # == 1 - p_t
        if float(gamma).is_integer() and 0 < gamma <= 8:
            w = omp                                       # small-int gamma: VPU muls
            for _ in range(int(gamma) - 1):
                w = w * omp
        else:
            w = omp ** jnp.float32(gamma)
        loss = ce * w

    # Reduce over the class (sublane) axis each step -> C-fold smaller
    # accumulator read-modify-write; cross-lane reduce only in the epilogue.
    loss_c = jnp.sum(loss, axis=1, keepdims=True)         # (bn, 1, t_hw)

    if needs_mask:
        # Only the last lane tile is ragged; keep the hot loop mask-free.
        @pl.when(j == last_j)
        def _():
            col = j * t_hw + jax.lax.broadcasted_iota(jnp.int32, loss_c.shape, 2)
            acc_ref[...] += jnp.where(col < hw, loss_c, 0.0)

        @pl.when(j < last_j)
        def _():
            acc_ref[...] += loss_c
    else:
        acc_ref[...] += loss_c

    @pl.when(j == last_j)
    def _():
        out_ref[0, 0] = jnp.sum(acc_ref[...]) * jnp.float32(scale)


def sigmoid_focal_loss(pred, target, *, alpha=-1.0, gamma=0.0,
                       reduction="mean", ignore_index=None,
                       vmem_tile_bytes=6 << 20):
    """pred: (N, C, H, W) float logits; target: (N, H, W) int labels."""
    if alpha >= 0:
        # TODO(synk): PyTorch's alpha>=0 branch multiplies alpha by the integer
        # label tensor (N,H,W) against an (N,H,W,C) loss, which does not
        # broadcast; unreachable under the module defaults (alpha=-1).
        raise NotImplementedError("alpha >= 0 path not supported")
    if ignore_index is not None:
        # TODO(synk): ignore_index needs data-dependent masking and a dynamic
        # element count in the mean; not wired up (module default is None).
        raise NotImplementedError("ignore_index not supported")
    if reduction not in ("mean", "sum"):
        # TODO(synk): reduction='none' would need a full (N,H,W,C) output.
        raise NotImplementedError("only 'mean' and 'sum' reductions supported")

    N, C, H, W = pred.shape
    hw = H * W
    hw128 = _round_up(hw, 128)

    # --- Tile sizing -------------------------------------------------------
    # Target ~vmem_tile_bytes for the f32 (bn, C, t_hw) slab. For small H*W,
    # widen over the batch axis so each grid step still does a large DMA; for
    # large H*W, tile HW (lane axis) and keep bn = 1.
    per_batch_f32 = C * hw128 * 4
    if per_batch_f32 <= vmem_tile_bytes:
        t_hw = hw128
        bn = 1
        for d in range(N, 0, -1):
            if N % d == 0 and d * per_batch_f32 <= vmem_tile_bytes:
                bn = d
                break
    else:
        bn = 1
        t_hw = max(128, (vmem_tile_bytes // (C * 4)) // 128 * 128)

    grid_n = N // bn
    grid_j = pl.cdiv(hw, t_hw)
    needs_mask = (grid_j * t_hw != hw)

    # NCHW-native, contiguous reshapes only — no pad / transpose pass over HBM.
    p3 = pred.reshape(N, C, hw)
    t3 = target.reshape(N, 1, hw).astype(jnp.int32)

    count = N * hw * C
    scale = (1.0 / float(count)) if reduction == "mean" else 1.0

    # Explicit VMEM budget: 2x-buffered inputs + ~5 f32 full-tile elementwise
    # temporaries + accumulator + headroom, clamped to stay within v7x's
    # 64 MiB physical VMEM (also lifts v5e's 16 MiB scoped default).
    in_tile_bytes = bn * C * t_hw * p3.dtype.itemsize + bn * t_hw * 4
    f32_tile_bytes = bn * C * t_hw * 4
    acc_bytes = bn * t_hw * 4
    vmem_limit = 2 * in_tile_bytes + 5 * f32_tile_bytes + acc_bytes + (2 << 20)
    vmem_limit = int(max(8 << 20, min(vmem_limit, 56 << 20)))

    kernel = functools.partial(
        _focal_kernel, gamma=float(gamma), scale=scale, hw=hw, t_hw=t_hw,
        needs_mask=needs_mask)

    out = pl.pallas_call(
        kernel,
        out_shape=jax.ShapeDtypeStruct((grid_n, 1), jnp.float32),
        grid_spec=pltpu.PrefetchScalarGridSpec(
            num_scalar_prefetch=0,
            grid=(grid_n, grid_j),
            in_specs=[
                pl.BlockSpec((bn, C, t_hw), lambda n, j: (n, 0, j)),
                pl.BlockSpec((bn, 1, t_hw), lambda n, j: (n, 0, j)),
            ],
            out_specs=pl.BlockSpec((1, 1), lambda n, j: (n, 0),
                                   memory_space=pltpu.MemorySpace.SMEM),
            scratch_shapes=[pltpu.VMEM((bn, 1, t_hw), jnp.float32)],
        ),
        compiler_params=pltpu.CompilerParams(
            dimension_semantics=("parallel", "arbitrary"),
            vmem_limit_bytes=vmem_limit),
    )(p3, t3)

    # Tiny final reduction over per-batch-block partials.
    return jnp.sum(out)


def _reference(pred, target, gamma=0.0):
    # Pure-JAX reference mirroring the PyTorch forward (alpha < 0, mean).
    N, C, H, W = pred.shape
    x = jnp.transpose(pred, (0, 2, 3, 1)).astype(jnp.float32)
    y = jax.nn.one_hot(target, C, dtype=jnp.float32)
    p = jax.nn.sigmoid(x)
    ce = jnp.maximum(x, 0.0) - x * y + jnp.log1p(jnp.exp(-jnp.abs(x)))
    p_t = p * y + (1.0 - p) * (1.0 - y)
    loss = ce * (1.0 - p_t) ** gamma
    return jnp.mean(loss)


if __name__ == "__main__":
    key = jax.random.PRNGKey(0)
    k_pred, k_tgt = jax.random.split(key)

    N, C, H, W = 2, 4, 16, 16
    pred = jax.random.normal(k_pred, (N, C, H, W), dtype=jnp.float32)
    target = jax.random.randint(k_tgt, (N, H, W), 0, C, dtype=jnp.int32)

    loss = sigmoid_focal_loss(pred, target)
    loss = jax.block_until_ready(loss)

    ref = _reference(pred, target)
    assert jnp.allclose(loss, ref, rtol=1e-5, atol=1e-6), (loss, ref)

    # also exercise the gamma != 0 (small-int) path once for coverage
    loss2 = jax.block_until_ready(sigmoid_focal_loss(pred, target, gamma=2.0))
    ref2 = _reference(pred, target, gamma=2.0)
    assert jnp.allclose(loss2, ref2, rtol=1e-5, atol=1e-6), (loss2, ref2)

    print("KERNEL_OK")
</pallas_src>

<mosaic_0001>
module attributes {stable_mosaic.version = 11 : i64} {
  func.func @_focal_kernel(%arg0: i32, %arg1: i32, %arg2: memref<2x4x256xf32, #tpu.memory_space<vmem>>, %arg3: memref<2x1x256xi32, #tpu.memory_space<vmem>>, %arg4: memref<1x1xf32, #tpu.memory_space<smem>>, %arg5: memref<2x1x256xf32, #tpu.memory_space<vmem>>) attributes {dimension_semantics = [#tpu.dimension_semantics<parallel>, #tpu.dimension_semantics<arbitrary>], iteration_bounds = array<i64: 1, 1>, scalar_prefetch = 0 : i64, scratch_operands = 1 : i64, tpu.core_type = #tpu.core_type<tc>, window_params = [{transform_indices = @transform_0, window_bounds = array<i64: 2, 4, 256>}, {transform_indices = @transform_1, window_bounds = array<i64: 2, 1, 256>}, {transform_indices = @transform_2, window_bounds = array<i64: 1, 1>}]} {
    %c0_i32 = arith.constant 0 : i32
    %0 = arith.cmpi eq, %arg1, %c0_i32 : i32
    %1 = arith.extui %0 : i1 to i32
    %c0_i32_0 = arith.constant 0 : i32
    %2 = arith.cmpi ne, %1, %c0_i32_0 : i32
    scf.if %2 {
      %cst_16 = arith.constant 0.000000e+00 : f32
      %28 = vector.broadcast %cst_16 : f32 to vector<2x1x256xf32>
      %c0_17 = arith.constant 0 : index
      %c0_18 = arith.constant 0 : index
      %c0_19 = arith.constant 0 : index
      %29 = vector.load %arg5[%c0_17, %c0_18, %c0_19] : memref<2x1x256xf32, #tpu.memory_space<vmem>>, vector<2x1x256xf32>
      tpu.vector_store %arg5[%c0_17, %c0_18, %c0_19], %28 {strides = array<i32>} : memref<2x1x256xf32, #tpu.memory_space<vmem>>, vector<2x1x256xf32>,
    } else {
    }
    %c0 = arith.constant 0 : index
    %c0_1 = arith.constant 0 : index
    %c0_2 = arith.constant 0 : index
    %3 = vector.load %arg2[%c0, %c0_1, %c0_2] : memref<2x4x256xf32, #tpu.memory_space<vmem>>, vector<2x4x256xf32>
    %c0_3 = arith.constant 0 : index
    %c0_4 = arith.constant 0 : index
    %c0_5 = arith.constant 0 : index
    %4 = vector.load %arg3[%c0_3, %c0_4, %c0_5] : memref<2x1x256xi32, #tpu.memory_space<vmem>>, vector<2x1x256xi32>
    %5 = tpu.iota {dimensions = array<i32: 1>} : vector<2x4x256xi32>
    %6 = vector.broadcast %4 : vector<2x1x256xi32> to vector<2x4x256xi32>
    %7 = arith.cmpi eq, %5, %6 : vector<2x4x256xi32>
    %8 = arith.extui %7 : vector<2x4x256xi1> to vector<2x4x256xi32>
    %9 = arith.sitofp %8 : vector<2x4x256xi32> to vector<2x4x256xf32>
    %10 = math.absf %3 : vector<2x4x256xf32>
    %cst = arith.constant 0.000000e+00 : f32
    %11 = vector.broadcast %cst : f32 to vector<2x4x256xf32>
    %12 = arith.subf %11, %10 : vector<2x4x256xf32>
    %13 = math.exp %12 : vector<2x4x256xf32>
    %cst_6 = arith.constant 0.000000e+00 : f32
    %14 = vector.broadcast %cst_6 : f32 to vector<2x4x256xf32>
    %15 = arith.maximumf %3, %14 : vector<2x4x256xf32>
    %16 = arith.mulf %3, %9 : vector<2x4x256xf32>
    %17 = arith.subf %15, %16 : vector<2x4x256xf32>
    %18 = math.log1p %13 : vector<2x4x256xf32>
    %19 = arith.addf %17, %18 : vector<2x4x256xf32>
    %cst_7 = arith.constant dense<0.000000e+00> : vector<2x256xf32>
    %20 = vector.multi_reduction <add>, %19, %cst_7 [1] : vector<2x4x256xf32> to vector<2x256xf32>
    %21 = vector.shape_cast %20 : vector<2x256xf32> to vector<2x1x256xf32>
    %c0_8 = arith.constant 0 : index
    %c0_9 = arith.constant 0 : index
    %c0_10 = arith.constant 0 : index
    %22 = vector.load %arg5[%c0_8, %c0_9, %c0_10] : memref<2x1x256xf32, #tpu.memory_space<vmem>>, vector<2x1x256xf32>
    %23 = arith.addf %22, %21 : vector<2x1x256xf32>
    %c0_11 = arith.constant 0 : index
    %c0_12 = arith.constant 0 : index
    %c0_13 = arith.constant 0 : index
    %24 = vector.load %arg5[%c0_11, %c0_12, %c0_13] : memref<2x1x256xf32, #tpu.memory_space<vmem>>, vector<2x1x256xf32>
    tpu.vector_store %arg5[%c0_11, %c0_12, %c0_13], %23 {strides = array<i32>} : memref<2x1x256xf32, #tpu.memory_space<vmem>>, vector<2x1x256xf32>,
    %c0_i32_14 = arith.constant 0 : i32
    %25 = arith.cmpi eq, %arg1, %c0_i32_14 : i32
    %26 = arith.extui %25 : i1 to i32
    %c0_i32_15 = arith.constant 0 : i32
    %27 = arith.cmpi ne, %26, %c0_i32_15 : i32
    scf.if %27 {
      %c0_16 = arith.constant 0 : index
      %c0_17 = arith.constant 0 : index
      %c0_18 = arith.constant 0 : index
      %28 = vector.load %arg5[%c0_16, %c0_17, %c0_18] : memref<2x1x256xf32, #tpu.memory_space<vmem>>, vector<2x1x256xf32>
      %29 = vector.shape_cast %28 : vector<2x1x256xf32> to vector<1x2x1x256xf32>
      %cst_19 = arith.constant dense<0.000000e+00> : vector<1xf32>
      %30 = vector.multi_reduction <add>, %29, %cst_19 [1, 2, 3] : vector<1x2x1x256xf32> to vector<1xf32>
      %31 = vector.shape_cast %30 : vector<1xf32> to vector<1x1x1x1xf32>
      %32 = vector.extract %31[0, 0, 0, 0] : f32 from vector<1x1x1x1xf32>
      %cst_20 = arith.constant 4.8828125E-4 : f32
      %33 = arith.mulf %32, %cst_20 : f32
      %c0_21 = arith.constant 0 : index
      %c0_22 = arith.constant 0 : index
      %34 = memref.load %arg4[%c0_21, %c0_22] : memref<1x1xf32, #tpu.memory_space<smem>>
      memref.store %33, %arg4[%c0_21, %c0_22] : memref<1x1xf32, #tpu.memory_space<smem>>
    } else {
    }
    return
  }
  func.func @transform_0(%arg0: i32, %arg1: i32) -> (i32, i32, i32) {
    %c0_i32 = arith.constant 0 : i32
    %c0_i32_0 = arith.constant 0 : i32
    return %arg0, %c0_i32, %arg1 : i32, i32, i32
  }
  func.func @transform_1(%arg0: i32, %arg1: i32) -> (i32, i32, i32) {
    %c0_i32 = arith.constant 0 : i32
    %c0_i32_0 = arith.constant 0 : i32
    return %arg0, %c0_i32, %arg1 : i32, i32, i32
  }
  func.func @transform_2(%arg0: i32, %arg1: i32) -> (i32, i32) {
    %c0_i32 = arith.constant 0 : i32
    %c0_i32_0 = arith.constant 0 : i32
    return %arg0, %c0_i32 : i32, i32
  }
}

</mosaic_0001>

<bundles_post_ra>
// kernel: tpu_custom_call.1
= control target key start
LH: loop header
LB: loop body
LE: loop exit
PB: predicated region body
PF: predicated region fallthrough
CT: control target
= control target key end

     0   :  { %7 = vsyncpa [#allocation4], 0  ;;  %s378_s0 = inlined_call_operand.hbm [shape: f32[2,4,256], index: 0, kind: input, shape index: {}]   ;;  %s379_s1 = inlined_call_operand.hbm [shape: s32[2,1,256], index: 1, kind: input, shape index: {}]   ;;  %s380_s2 = inlined_call_operand.hbm [shape: f32[1,1], index: 2, kind: output, shape index: {}]  }
   0x1   :  { %8 = vsyncpa [#allocation7], 0 }
   0x2   :  { %9 = vsyncpa [#allocation5], 0  ;;  %s14_s11 = sshll.u32 %s378_s0, 4  ;;  %s322_s12 = smov [#allocation3]   ;;  %s15_s11 = int_to_ptr.hbm [resolvable:$true] %s14_s11 }
   0x3   :  { %s16_s13 = sshll.u32 %s322_s12, 4  ;;  %s27_s16 = sshll.u32 %s379_s1, 4  ;;  %s17_s13 = int_to_ptr.vmem [resolvable:$true] %s16_s13  ;;  %s28_s16 = int_to_ptr.hbm [resolvable:$true] %s27_s16 }
   0x4   :  { %s323_s17 = smov 128   ;;  %s324_s18 = smov 8  }
   0x5   :  { %22 = dma.hbm_to_vmem [thread:$0]  %s15_s11, 256, %s17_s13, [#allocation4], %s323_s17, %s323_s17, %s324_s18  }
   0x6   :  { %s325_s19 = smov [#allocation6]   ;;  %s326_s21 = smov 32  }
   0x7   :  { %s29_s20 = sshll.u32 %s325_s19, 4  ;;  %s327_s22 = smov 2   ;;  %s30_s20 = int_to_ptr.vmem [resolvable:$true] %s29_s20 }
   0x8   :  { %35 = dma.hbm_to_vmem [thread:$0]  %s28_s16, 64, %s30_s20, [#allocation7], %s326_s21, %s326_s21, %s327_s22  }
   0x9   :  { %316 = dma.done.wait [#allocation4], 256  }
   0xa   :  { %317 = vsyncadd [#allocation4], 4294967040 }
   0xb   :  { %318 = dma.done.wait [#allocation7], 64  }
   0xc   :  { %319 = vsyncadd [#allocation7], 4294967232  ;;  %v48_v0 = vlaneseq  ;;  %v328_v2 = vmov 0.0   ;;  %v54_v3 = vld [vmem:[#allocation3] sm:$0xff]  ;;  %v55_v4 = vld [vmem:[#allocation3 + $0x8] sm:$0xff]  ;;  %vm92_vm5 = vcmask 1043456  }
   0xd   :  { %v56_v5 = vld [vmem:[#allocation6] sm:$0x3]  ;;  %v57_v6 = vld [vmem:[#allocation6 + $0x2] sm:$0x3]  ;;  %v76_v9 = vand.u32 2147483647, %v54_v3 }
   0xe   :  { %vm351_vm0 = vcmp.lt.s32.totalorder %v48_v0, 256  ;;  %v59_v7 = vshrl.u32 %v48_v0, 7  ;;  %v61_v8 = vperm.slane %v56_v5, 1  ;;  %v77_v10 = vand.u32 2147483647, %v55_v4  ;;  %s222_s23 = sshll.u32 %s380_s2, 4  ;;  %s223_s23 = int_to_ptr.hbm [resolvable:$true] %s222_s23 }
   0xf   :  { %52 = vst.msk [vmem:[#allocation2] sm:$0x3] %vm351_vm0, %v328_v2  ;;  %v63_v11 = vperm.slane %v57_v6, 1  ;;  %v78_v12 = vsub.f32 0.0, %v76_v9  ;;  %v60_v13 = vperm.slane %v56_v5, 0  ;;  %v62_v16 = vperm.slane %v57_v6, 0 }
  0x10   :  { %53 = vst.msk [vmem:[#allocation2 + $0x2] sm:$0x3] %vm351_vm0, %v328_v2  ;;  %vm65_vm1 = vcmp.eq.s32.totalorder %v59_v7, %v61_v8  ;;  %v79_v14 = vsub.f32 0.0, %v77_v10  ;;  %v84_v33 = vmax.f32 %v54_v3, 0.0  ;;  %v85_v37 = vmax.f32 %v55_v4, 0.0  ;;  %s329_s26 = smov [#allocation8]  }
  0x11   :  { %v80_v15 = vmul.f32 1.442695, %v78_v12  ;;  %vm67_vm2 = vcmp.eq.s32.totalorder %v59_v7, %v63_v11  ;;  %v235_v18 = vsel %vm65_vm1, 1.0, %v328_v2  ;;  %vm64_vm3 = vcmp.eq.s32.totalorder %v59_v7, %v60_v13 }
  0x12   :  { %v82_v17 = vmul.f32 1.442695, %v79_v14  ;;  %v237_v19 = vsel %vm67_vm2, 1.0, %v328_v2  ;;  %vm66_vm4 = vcmp.eq.s32.totalorder %v59_v7, %v62_v16  ;;  %v90_v20 = vrot.slane %v235_v18, 4 }
  0x13   :  { %248 = vpow2.f32 %v80_v15  ;;  %v234_v21 = vsel %vm64_vm3, 1.0, %v328_v2  ;;  %v91_v23 = vrot.slane %v237_v19, 4  ;;  %v236_v24 = vsel %vm66_vm4, 1.0, %v328_v2 }
  0x14   :  { %250 = vpow2.f32 %v82_v17  ;;  %v93_v28 = vsel %vm92_vm5, %v234_v21, %v90_v20  ;;  %vm170_vm8 = vcmask 1040384  }
  0x15   :  { %v94_v30 = vsel %vm92_vm5, %v236_v24, %v91_v23  ;;  %v97_v34 = vmul.f32 %v93_v28, %v54_v3 }
  0x16   :  { %v98_v38 = vmul.f32 %v94_v30, %v55_v4  ;;  %v162_v21 = vld [vmem:[#allocation2] sm:$0x3] }
  0x17   :  { %v99_v42 = vsub.f32 %v84_v33, %v97_v34  ;;  %v163_v23 = vld [vmem:[#allocation2 + $0x2] sm:$0x3] }
  0x18   :  { %v100_v46 = vsub.f32 %v85_v37, %v98_v38 }
  0x19   :  { %v249_v22 = vpop.eup %248 }
  0x1a   :  { %v101_v25 = vadd.f32 1.0, %v249_v22  ;;  %v104_v26 = vmul.f32 -0.5, %v249_v22  ;;  %v251_v27 = vpop.eup %250  ;;  %v107_v35 = vand.u32 2147483647, %v249_v22 }
  0x1b   :  { %v110_v29 = vadd.f32 1.0, %v251_v27  ;;  %v113_v32 = vmul.f32 -0.5, %v251_v27  ;;  %v116_v39 = vand.u32 2147483647, %v251_v27 }
  0x1c   :  { %252 = vlog2.f32 %v101_v25  ;;  %v105_v31 = vadd.f32 1.0, %v104_v26  ;;  %vm108_vm6 = vcmp.lt.f32.partialorder %v107_v35, 0.0004427343 }
  0x1d   :  { %254 = vlog2.f32 %v110_v29  ;;  %v114_v36 = vadd.f32 1.0, %v113_v32  ;;  %vm117_vm7 = vcmp.lt.f32.partialorder %v116_v39, 0.0004427343 }
  0x1e   :  { %v106_v40 = vmul.f32 %v249_v22, %v105_v31 }
  0x1f   :  { %v115_v44 = vmul.f32 %v251_v27, %v114_v36 }
  0x22   :  { %v253_v41 = vpop.eup %252 }
  0x23   :  { %v103_v43 = vmul.f32 0.6931472, %v253_v41  ;;  %v255_v45 = vpop.eup %254 }
  0x24   :  { %v112_v48 = vmul.f32 0.6931472, %v255_v45 }
  0x25   :  { %v109_v47 = vsel %vm108_vm6, %v106_v40, %v103_v43 }
  0x26   :  { %v119_v49 = vadd.f32 %v109_v47, %v99_v42  ;;  %v118_v50 = vsel %vm117_vm7, %v115_v44, %v112_v48 }
  0x27   :  { %v120_v51 = vadd.f32 %v118_v50, %v100_v46 }
  0x28   :  { %123 = vst [vmem:[#allocation1] ss:$2 sm:$0xff] %v119_v49 }
  0x29   :  { %127 = vst [vmem:[#allocation1 + $0x10] ss:$2 sm:$0xff] %v120_v51 }
  0x2f   :  { %v124_v52 = vld.sshfl [vmem:[#allocation1] sm:$0xff pattern:$0x75316420]  ;;  %v125_v53 = vld.sshfl [vmem:[#allocation1 + $0x8] sm:$0xff pattern:$0x75316420] }
  0x30   :  { %v134_v54 = vsel %vm92_vm5, %v124_v52, 0.0  ;;  %v141_v55 = vsel %vm92_vm5, %v125_v53, 0.0  ;;  %v128_v56 = vld.sshfl [vmem:[#allocation1 + $0x10] sm:$0xff pattern:$0x75316420] }
  0x31   :  { %v129_v57 = vld.sshfl [vmem:[#allocation1 + $0x18] sm:$0xff pattern:$0x75316420]  ;;  %v135_v58 = vrot.slane %v134_v54, 4  ;;  %v142_v59 = vrot.slane %v141_v55, 4  ;;  %v148_v60 = vsel %vm92_vm5, %v128_v56, 0.0 }
  0x32   :  { %v155_v61 = vsel %vm92_vm5, %v129_v57, 0.0  ;;  %v149_v62 = vrot.slane %v148_v60, 4 }
  0x33   :  { %v156_v63 = vrot.slane %v155_v61, 4  ;;  %v136_v0 = vadd.f32 %v135_v58, %v134_v54  ;;  %v143_v2 = vadd.f32 %v142_v59, %v141_v55 }
  0x34   :  { %v150_v3 = vadd.f32 %v149_v62, %v148_v60 }
  0x35   :  { %v157_v4 = vadd.f32 %v156_v63, %v155_v61  ;;  %v137_v5 = vrot.slane %v136_v0, 2  ;;  %v144_v6 = vrot.slane %v143_v2, 2 }
  0x36   :  { %v151_v7 = vrot.slane %v150_v3, 2 }
  0x37   :  { %v158_v8 = vrot.slane %v157_v4, 2  ;;  %v138_v9 = vadd.f32 %v137_v5, %v136_v0  ;;  %v145_v10 = vadd.f32 %v144_v6, %v143_v2 }
  0x38   :  { %v152_v11 = vadd.f32 %v151_v7, %v150_v3 }
  0x39   :  { %v159_v12 = vadd.f32 %v158_v8, %v157_v4  ;;  %v139_v13 = vrot.slane %v138_v9, 1  ;;  %v146_v14 = vrot.slane %v145_v10, 1 }
  0x3a   :  { %v153_v15 = vrot.slane %v152_v11, 1 }
  0x3b   :  { %v160_v16 = vrot.slane %v159_v12, 1  ;;  %v140_v17 = vadd.f32 %v139_v13, %v138_v9  ;;  %v147_v18 = vadd.f32 %v146_v14, %v145_v10 }
  0x3c   :  { %v154_v19 = vadd.f32 %v153_v15, %v152_v11 }
  0x3d   :  { %v161_v20 = vadd.f32 %v160_v16, %v159_v12  ;;  %v168_v22 = vrot.slane %v147_v18, 7 }
  0x3f   :  { %v169_v24 = vrot.slane %v161_v20, 7  ;;  %v171_v25 = vsel %vm170_vm8, %v140_v17, %v168_v22 }
  0x40   :  { %v175_v27 = vadd.f32 %v171_v25, %v162_v21 }
  0x41   :  { %v172_v26 = vsel %vm170_vm8, %v154_v19, %v169_v24 }
  0x42   :  { %v176_v28 = vadd.f32 %v172_v26, %v163_v23  ;;  %181 = vst.msk [vmem:[#allocation2] sm:$0x3] %vm351_vm0, %v175_v27 }
  0x44   :  { %182 = vst.msk [vmem:[#allocation2 + $0x2] sm:$0x3] %vm351_vm0, %v176_v28 }
  0x49   :  { %v186_v29 = vld [vmem:[#allocation2] sm:$0x3] }
  0x4a   :  { %v190_v31 = vperm.slane %v186_v29, 0  ;;  %v191_v32 = vperm.slane %v186_v29, 1 }
  0x4b   :  { %v187_v30 = vld [vmem:[#allocation2 + $0x2] sm:$0x3] }
  0x4c   :  { %v192_v33 = vperm.slane %v187_v30, 0  ;;  %v193_v34 = vperm.slane %v187_v30, 1  ;;  %v198_v35 = vsel %vm170_vm8, %v190_v31, 0.0  ;;  %v199_v36 = vsel %vm170_vm8, %v191_v32, 0.0 }
  0x4d   :  { %v200_v37 = vadd.f32 %v199_v36, %v198_v35 }
  0x4e   :  { %v201_v38 = vsel %vm170_vm8, %v192_v33, 0.0  ;;  %v203_v39 = vsel %vm170_vm8, %v193_v34, 0.0 }
  0x4f   :  { %v202_v40 = vadd.f32 %v201_v38, %v200_v37 }
  0x51   :  { %v204_v41 = vadd.f32 %v203_v39, %v202_v40 }
  0x53   :  { %205 = vadd.xlane.f32.xlu0 %v204_v41 }
  0xc6   :  { %v206_v1 = vpop.xlane.xlu0 %205 }
  0xc7   :  { %v207_v42 = vrot.slane %v206_v1, 4 }
  0xc9   :  { %v208_v43 = vadd.f32 %v207_v42, %v206_v1 }
  0xcb   :  { %v209_v44 = vrot.slane %v208_v43, 2 }
  0xcd   :  { %v210_v45 = vadd.f32 %v209_v44, %v208_v43 }
  0xcf   :  { %v211_v46 = vrot.slane %v210_v45, 1 }
  0xd1   :  { %v212_v47 = vadd.f32 %v211_v46, %v210_v45 }
  0xd3   :  { %238 = vpush %v212_v47 }
 0x104   :  { %s239_s24 = spop %238 }
 0x105   :  { %s214_s25 = smul.f32 0.00048828125, %s239_s24 }
 0x107   :  { %216 = sst [smem:[#allocation8]] %s214_s25 }
 0x108   :  { %225 = dma.smem_to_hbm %s329_s26, 16, %s223_s23, [#allocation5]  }
 0x109   :  { %320 = dma.done.wait [#allocation5], 16  }
 0x10a   :  { %321 = vsyncadd [#allocation5], 4294967280 }
 0x10b   :  { %230 = sfence }
 0x10c   :  { %231 = vsyncpa [#allocation4], 1 }
 0x10d   :  { %232 = vsyncpa [#allocation7], 1 }
 0x10e   :  { %233 = vsyncpa [#allocation5], 1 }

</bundles_post_ra>
